<compile_context>
chip_gen: v7x
topology: tpu7x:2x2x1
jax: 0.10.0
libtpu: 0.0.40
codegen_flags: <defaults>
</compile_context>

<pallas_src>
import functools
from typing import NamedTuple

import jax
import jax.numpy as jnp
import numpy as np
from jax import lax
from jax.experimental import pallas as pl
from jax.experimental.pallas import tpu as pltpu

DT = 0.1  # hardcoded in the PyTorch forward: integrator(differentiator, 0.0, z_init, 0.1)


class Meta(NamedTuple):
    H: int
    W: int
    Cin: int
    Clat: int
    Cdec: int
    dec_lanes: int   # lane-padded width of the decoded output (>= W*Cdec, multiple of 128)
    roll_up: int     # pltpu.roll shift that moves row r-1 into row r (direction probe)


# ----------------------------------------------------------------------------
# One-time pltpu.roll direction probe (guards against the rotate sign convention).
# ----------------------------------------------------------------------------
_ROLL_UP = None


def _roll_up_shift():
    global _ROLL_UP
    if _ROLL_UP is None:
        def probe(x_ref, o_ref):
            o_ref[...] = pltpu.roll(x_ref[...], 1, axis=0)

        x = jnp.tile(jnp.arange(8, dtype=jnp.float32)[:, None], (1, 128))
        out = np.asarray(
            pl.pallas_call(probe, out_shape=jax.ShapeDtypeStruct((8, 128), jnp.float32))(x))
        # jnp.roll convention: out[1] == x[0] (== 0); otherwise the convention is flipped.
        _ROLL_UP = 1 if float(out[1, 0]) == 0.0 else -1
    return _ROLL_UP


# ----------------------------------------------------------------------------
# In-kernel building blocks (all operands stay in vregs / VMEM).
# ----------------------------------------------------------------------------
def _conv(x, w_ref, b_ref, *, H, up, relu):
    """3x3 'same' conv on a lane-packed (rows, W*Cin) slab.

    Row shifts (h-1 / h+1, zero padded, batch-boundary safe) are XLU sublane rolls
    plus a VPU mask; all 3 kh taps are fused into a single MXU matmul against the
    pre-expanded (3*W*Cin, W*Cout) block-banded weight.
    """
    m = x.shape[0]
    h = lax.broadcasted_iota(jnp.int32, x.shape, 0) % H          # per-batch-element row id
    xm = jnp.where(h == 0,     0.0, pltpu.roll(x, up % m,    axis=0))   # rows h-1
    xp = jnp.where(h == H - 1, 0.0, pltpu.roll(x, (-up) % m,  axis=0))  # rows h+1
    xcat = jnp.concatenate([xm, x, xp], axis=-1)                  # (rows, 3*W*Cin)
    out = jnp.dot(xcat, w_ref[...], preferred_element_type=jnp.float32) + b_ref[...]
    return jnp.maximum(out, 0.0) if relu else out


def _two_conv(x, w1, b1, w2, b2, *, H, up):
    return _conv(_conv(x, w1, b1, H=H, up=up, relu=True), w2, b2, H=H, up=up, relu=False)


def _rk4(z, f, dt):
    k1 = f(z)
    k2 = f(z + (0.5 * dt) * k1)
    k3 = f(z + (0.5 * dt) * k2)
    k4 = f(z + dt * k3)
    return z + (dt / 6.0) * (k1 + 2.0 * k2 + 2.0 * k3 + k4)


# ----------------------------------------------------------------------------
# Fused kernels.
# ----------------------------------------------------------------------------
def _train_kernel(x_ref,
                  we1, be1, we2, be2,        # encoder        conv1/conv2
                  wf1, bf1, wf2, bf2,        # differentiator conv1/conv2
                  wg1, bg1, wg2, bg2,        # decoder        conv1/conv2
                  z_ref, dec_ref, *, H, up, dt, integrate):
    two = functools.partial(_two_conv, H=H, up=up)
    z = two(x_ref[...], we1, be1, we2, be2)
    if integrate:                              # one RK4 step, dt = 0.1
        z = _rk4(z, lambda u: two(u, wf1, bf1, wf2, bf2), dt)
    z_ref[...] = z
    dec_ref[...] = two(z, wg1, bg1, wg2, bg2)


def _pred_kernel(x_ref,
                 we1, be1, we2, be2,
                 wf1, bf1, wf2, bf2,
                 wg1, bg1, wg2, bg2,
                 z_ref, dec_ref, z_scr, *, H, up, dt):
    two = functools.partial(_two_conv, H=H, up=up)
    t = pl.program_id(1)                       # time axis ('arbitrary', z carried in VMEM)

    @pl.when(t == 0)
    def _():
        z_scr[...] = two(x_ref[...], we1, be1, we2, be2)          # encode at step 0

    @pl.when(t > 0)
    def _():
        z_scr[...] = _rk4(z_scr[...], lambda u: two(u, wf1, bf1, wf2, bf2), dt)

    z = z_scr[...]
    z_ref[0] = z
    dec_ref[0] = two(z, wg1, bg1, wg2, bg2)


# ----------------------------------------------------------------------------
# pallas_call wrappers.
# ----------------------------------------------------------------------------
def _const_specs(consts, n_axes):
    # Constant (full-array) blocks: index never changes -> fetched once, kept in VMEM.
    if n_axes == 1:
        return [pl.BlockSpec(a.shape, lambda g: (0, 0)) for a in consts]
    return [pl.BlockSpec(a.shape, lambda g, t: (0, 0)) for a in consts]


def _train_call(x2d, consts, meta, *, integrate, G):
    NH, WCin = x2d.shape
    Mblk = NH // G
    WClat = meta.W * meta.Clat
    kernel = functools.partial(_train_kernel, H=meta.H, up=meta.roll_up, dt=DT,
                               integrate=integrate)
    return pl.pallas_call(
        kernel,
        out_shape=(jax.ShapeDtypeStruct((NH, WClat), jnp.float32),
                   jax.ShapeDtypeStruct((NH, meta.dec_lanes), jnp.float32)),
        grid=(G,),
        in_specs=[pl.BlockSpec((Mblk, WCin), lambda g: (g, 0))] + _const_specs(consts, 1),
        out_specs=(pl.BlockSpec((Mblk, WClat), lambda g: (g, 0)),
                   pl.BlockSpec((Mblk, meta.dec_lanes), lambda g: (g, 0))),
        compiler_params=pltpu.CompilerParams(dimension_semantics=("parallel",)),
    )(x2d, *consts)


def _pred_call(x2d, consts, meta, *, n_ts, G):
    NH, WCin = x2d.shape
    Mblk = NH // G
    WClat = meta.W * meta.Clat
    kernel = functools.partial(_pred_kernel, H=meta.H, up=meta.roll_up, dt=DT)
    return pl.pallas_call(
        kernel,
        out_shape=(jax.ShapeDtypeStruct((n_ts, NH, WClat), jnp.float32),
                   jax.ShapeDtypeStruct((n_ts, NH, meta.dec_lanes), jnp.float32)),
        grid=(G, n_ts),
        in_specs=[pl.BlockSpec((Mblk, WCin), lambda g, t: (g, 0))] + _const_specs(consts, 2),
        out_specs=(pl.BlockSpec((1, Mblk, WClat), lambda g, t: (t, g, 0)),
                   pl.BlockSpec((1, Mblk, meta.dec_lanes), lambda g, t: (t, g, 0))),
        scratch_shapes=[pltpu.VMEM((Mblk, WClat), jnp.float32)],   # z stays resident over time
        compiler_params=pltpu.CompilerParams(
            dimension_semantics=("parallel", "arbitrary")),
    )(x2d, *consts)


# ----------------------------------------------------------------------------
# One-time weight preprocessing (run OUTSIDE the jitted forward).
# ----------------------------------------------------------------------------
def _w_shift_selector(Wd):
    """(3, W, W) selector with sel[kw, win, wout] = 1 iff win == wout + kw - 1."""
    sel = np.zeros((3, Wd, Wd), np.float32)
    for kw in range(3):
        for wo in range(Wd):
            wi = wo + kw - 1
            if 0 <= wi < Wd:
                sel[kw, wi, wo] = 1.0
    return jnp.asarray(sel)


def _expand_conv(w, b, sel, Wd, pad_lanes=None):
    """(3,3,Cin,Cout) HWIO weight -> (3*W*Cin, W*Cout) block-banded matrix (kw taps +
    w zero-padding folded in, kh taps stacked along K for one fused matmul against
    concat([x_{h-1}, x_h, x_{h+1}], lanes)); bias tiled to (1, W*Cout).  Optionally
    zero-pad the output lanes so the store is lane-dense."""
    Cin, Cout = int(w.shape[2]), int(w.shape[3])
    wbig = jnp.einsum("hkio,kab->haibo", w, sel).reshape(3 * Wd * Cin, Wd * Cout)
    bbig = jnp.tile(b, Wd).reshape(1, Wd * Cout)
    if pad_lanes is not None and pad_lanes > Wd * Cout:
        pad = pad_lanes - Wd * Cout
        wbig = jnp.pad(wbig, ((0, 0), (0, pad)))
        bbig = jnp.pad(bbig, ((0, 0), (0, pad)))
    return wbig.astype(jnp.float32), bbig.astype(jnp.float32)


def precompute_consts(params, H, Wd):
    enc, dec, dif = params["encoder"], params["decoder"], params["differentiator"]
    Cin = int(enc[0].shape[2])
    Clat = int(enc[3].shape[0])
    Cdec = int(dec[3].shape[0])
    dec_lanes = ((Wd * Cdec + 127) // 128) * 128      # lane-dense decoded store
    sel = _w_shift_selector(Wd)
    consts = (_expand_conv(enc[0], enc[1], sel, Wd)
              + _expand_conv(enc[2], enc[3], sel, Wd)
              + _expand_conv(dif[0], dif[1], sel, Wd)
              + _expand_conv(dif[2], dif[3], sel, Wd)
              + _expand_conv(dec[0], dec[1], sel, Wd)
              + _expand_conv(dec[2], dec[3], sel, Wd, pad_lanes=dec_lanes))
    meta = Meta(H=H, W=Wd, Cin=Cin, Clat=Clat, Cdec=Cdec,
                dec_lanes=dec_lanes, roll_up=_roll_up_shift())
    return consts, meta


# ----------------------------------------------------------------------------
# lp_model forward (mirrors the PyTorch control flow)
# ----------------------------------------------------------------------------
def lp_model_forward(consts, x_nchw, meta, n_ts=1, mode="train", num_batch_blocks=None):
    N, Cin, H, Wd = x_nchw.shape
    if (H, Wd, Cin) != (meta.H, meta.W, meta.Cin):
        raise ValueError("input shape does not match the precomputed weights")
    if num_batch_blocks is None:
        # Default 2 keeps both v7x TensorCores busy; use 1 on single-TC v5e/v6e to
        # fold the whole batch into the MXU M (sublane) axis.
        num_batch_blocks = 2 if (N >= 2 and N % 2 == 0) else 1
    G = num_batch_blocks
    if N % G != 0:
        raise ValueError("num_batch_blocks must divide the batch size")

    # Lane-packed, batch-folded-into-sublanes layout: (N*H, W*C).
    x2d = jnp.transpose(x_nchw, (0, 2, 3, 1)).reshape(N * H, Wd * Cin)

    def unpack(a, c):                          # (..., N*H, lanes>=W*c) -> (..., N, c, H, W)
        lead = a.shape[:-2]
        a = a[..., :Wd * c].reshape(lead + (N, H, Wd, c))
        k = len(lead)
        return jnp.transpose(a, tuple(range(k)) + (k, k + 3, k + 1, k + 2))

    if mode == "train":
        if n_ts not in (0, 1):
            raise ValueError("train mode supports n_ts in {0, 1} (as in the PyTorch module)")
        z2d, d2d = _train_call(x2d, consts, meta, integrate=(n_ts == 1), G=G)
        return unpack(z2d, meta.Clat), unpack(d2d, meta.Cdec)
    elif mode == "pred":
        z3d, d3d = _pred_call(x2d, consts, meta, n_ts=n_ts, G=G)
        return unpack(z3d, meta.Clat), unpack(d3d, meta.Cdec)
    raise ValueError(f"unknown mode {mode!r}")


# ----------------------------------------------------------------------------
# Pure-JAX reference (for correctness checks)
# ----------------------------------------------------------------------------
def _conv3x3_ref(x, w, b, relu=False):
    out = lax.conv_general_dilated(x, w, (1, 1), "SAME",
                                   dimension_numbers=("NHWC", "HWIO", "NHWC")) + b
    return jnp.maximum(out, 0.0) if relu else out


def _two_conv_ref(p, x):
    w1, b1, w2, b2 = p
    return _conv3x3_ref(_conv3x3_ref(x, w1, b1, relu=True), w2, b2)


def lp_model_forward_ref(params, x_nchw, n_ts=1, mode="train"):
    x = jnp.transpose(x_nchw, (0, 2, 3, 1))
    enc_p, dec_p, dif_p = params["encoder"], params["decoder"], params["differentiator"]
    f = lambda z: _two_conv_ref(dif_p, z)

    def rk4(z):
        k1 = f(z); k2 = f(z + DT / 2 * k1); k3 = f(z + DT / 2 * k2); k4 = f(z + DT * k3)
        return z + DT / 6.0 * (k1 + 2 * k2 + 2 * k3 + k4)

    nchw = lambda a: jnp.transpose(a, (0, 3, 1, 2))
    if mode == "train":
        z = _two_conv_ref(enc_p, x)
        if n_ts == 1:
            z = rk4(z)
        return nchw(z), nchw(_two_conv_ref(dec_p, z))
    z_list = [_two_conv_ref(enc_p, x)]
    for i in range(n_ts - 1):
        z_list.append(rk4(z_list[i]))
    return (jnp.stack([nchw(z) for z in z_list], 0),
            jnp.stack([nchw(_two_conv_ref(dec_p, z)) for z in z_list], 0))


# ----------------------------------------------------------------------------
# Deterministic parameter construction
# ----------------------------------------------------------------------------
def make_conv_params(key, cin, cout):
    kw, kb = jax.random.split(key)
    scale = 1.0 / np.sqrt(cin * 9)
    w = jax.random.uniform(kw, (3, 3, cin, cout), jnp.float32, -scale, scale)  # HWIO
    b = jax.random.uniform(kb, (cout,), jnp.float32, -scale, scale)
    return w, b


def make_params(key, c_in, c_hidden, c_latent):
    keys = jax.random.split(key, 6)
    enc = make_conv_params(keys[0], c_in, c_hidden) + make_conv_params(keys[1], c_hidden, c_latent)
    dec = make_conv_params(keys[2], c_latent, c_hidden) + make_conv_params(keys[3], c_hidden, c_in)
    dif = make_conv_params(keys[4], c_latent, c_hidden) + make_conv_params(keys[5], c_hidden, c_latent)
    return {"encoder": enc, "decoder": dec, "differentiator": dif}


# ----------------------------------------------------------------------------
if __name__ == "__main__":
    key = jax.random.PRNGKey(0)
    kx, kp = jax.random.split(key)

    N, C, H, W = 2, 4, 16, 16          # NCHW, like PyTorch
    C_HIDDEN, C_LATENT = 8, 8

    x = jax.random.normal(kx, (N, C, H, W), jnp.float32)
    params = make_params(kp, C, C_HIDDEN, C_LATENT)

    # One-time weight expansion + roll-direction probe (outside the jitted forward).
    consts, meta = precompute_consts(params, H, W)

    fwd = jax.jit(lp_model_forward,
                  static_argnames=("meta", "n_ts", "mode", "num_batch_blocks"))

    # -- train mode, n_ts=1: encode -> one RK4 step -> decode -------------------
    z, decoded = fwd(consts, x, meta=meta, n_ts=1, mode="train")
    z, decoded = jax.block_until_ready((z, decoded))
    assert z.shape == (N, C_LATENT, H, W)
    assert decoded.shape == (N, C, H, W)
    z_exp, dec_exp = lp_model_forward_ref(params, x, n_ts=1, mode="train")
    np.testing.assert_allclose(np.asarray(z), np.asarray(z_exp), rtol=2e-3, atol=2e-3)
    np.testing.assert_allclose(np.asarray(decoded), np.asarray(dec_exp), rtol=2e-3, atol=2e-3)

    # -- pred mode, n_ts=3: whole time loop fused inside one pallas_call --------
    zs, decs = fwd(consts, x, meta=meta, n_ts=3, mode="pred")
    zs, decs = jax.block_until_ready((zs, decs))
    assert zs.shape == (3, N, C_LATENT, H, W)
    assert decs.shape == (3, N, C, H, W)
    zs_exp, decs_exp = lp_model_forward_ref(params, x, n_ts=3, mode="pred")
    np.testing.assert_allclose(np.asarray(zs), np.asarray(zs_exp), rtol=2e-3, atol=2e-3)
    np.testing.assert_allclose(np.asarray(decs), np.asarray(decs_exp), rtol=2e-3, atol=2e-3)

    print("KERNEL_OK")
</pallas_src>

<mosaic_0001>
module attributes {stable_mosaic.version = 11 : i64} {
  func.func @probe(%arg0: memref<8x128xf32, #tpu.memory_space<vmem>>, %arg1: memref<8x128xf32, #tpu.memory_space<vmem>>) attributes {dimension_semantics = [], scalar_prefetch = 0 : i64, scratch_operands = 0 : i64, tpu.core_type = #tpu.core_type<tc>} {
    %c0 = arith.constant 0 : index
    %c0_0 = arith.constant 0 : index
    %0 = vector.load %arg0[%c0, %c0_0] : memref<8x128xf32, #tpu.memory_space<vmem>>, vector<8x128xf32>
    %c1_i32 = arith.constant 1 : i32
    %1 = tpu.dynamic_rotate %0 by %c1_i32 dim 0 : vector<8x128xf32>, i32 -> vector<8x128xf32>
    %c0_1 = arith.constant 0 : index
    %c0_2 = arith.constant 0 : index
    %2 = vector.load %arg1[%c0_1, %c0_2] : memref<8x128xf32, #tpu.memory_space<vmem>>, vector<8x128xf32>
    tpu.vector_store %arg1[%c0_1, %c0_2], %1 {strides = array<i32>} : memref<8x128xf32, #tpu.memory_space<vmem>>, vector<8x128xf32>,
    return
  }
}

</mosaic_0001>

<bundles_post_ra>
// kernel: tpu_custom_call.1
= control target key start
LH: loop header
LB: loop body
LE: loop exit
PB: predicated region body
PF: predicated region fallthrough
CT: control target
= control target key end

     0   :  { %6 = vsyncpa [#allocation3], 0  ;;  %s125_s0 = inlined_call_operand.hbm [shape: f32[8,128], index: 0, kind: input, shape index: {}]   ;;  %s126_s1 = inlined_call_operand.hbm [shape: f32[8,128], index: 1, kind: output, shape index: {}]  }
   0x1   :  { %7 = vsyncpa [#allocation4], 0  ;;  %s89_s6 = smov [#allocation2]   ;;  %s41_s10 = scalar_lea.hbm %s125_s0, 128 }
   0x2   :  { %s14_s7 = sshll.u32 %s89_s6, 4  ;;  %p42_p0 = scmp.ne.s32.totalorder %s125_s0, %s41_s10  ;;  %s15_s7 = int_to_ptr.vmem [resolvable:$true] %s14_s7 }
   0x3   :  { %p45_p1 = scmp.lt.u32.totalorder %s41_s10, %s125_s0 }
   0x5   :  { %p47_p2 = pnand %p45_p1, %p42_p0 }
   0x7   :  { %50 = shalt.err (!%p47_p2)
}
   0x8   :  { %s51_s15 = scalar_lea.vmem %s15_s7, 128  ;;  %p56_p4 = scmp.lt.s32.totalorder %s15_s7, %s15_s7 }
   0x9   :  { %p52_p3 = scmp.ne.s32.totalorder %s15_s7, %s51_s15  ;;  %p57_p5 = scmp.lt.s32.totalorder %s51_s15, %s51_s15 }
   0xb   :  { %p58_p6 = por %p57_p5, %p56_p4 }
   0xd   :  { %p59_p7 = pnand %p58_p6, %p52_p3 }
   0xf   :  { %62 = shalt.err (!%p59_p7)
}
  0x10   :  { %17 = dma.hbm_to_vmem [thread:$0]  %s125_s0, 128, %s15_s7, [#allocation3]  }
  0x11   :  { %85 = dma.done.wait [#allocation3], 128  }
  0x12   :  { %86 = vsyncadd [#allocation3], 4294967168  ;;  %s90_s18 = smov [#allocation5]   ;;  %v21_v0 = vld [vmem:[#allocation2] sm:$0xff] }
  0x13   :  { %s30_s19 = sshll.u32 %s90_s18, 4  ;;  %v22_v1 = vrot.slane %v21_v0, 7  ;;  %s31_s19 = int_to_ptr.vmem [resolvable:$true] %s30_s19 }
  0x14   :  { %s63_s20 = scalar_lea.vmem %s31_s19, 128  ;;  %p68_p9 = scmp.lt.s32.totalorder %s31_s19, %s31_s19 }
  0x15   :  { %23 = vst [vmem:[#allocation5] sm:$0xff] %v22_v1  ;;  %p64_p8 = scmp.ne.s32.totalorder %s31_s19, %s63_s20  ;;  %p69_p10 = scmp.lt.s32.totalorder %s63_s20, %s63_s20 }
  0x17   :  { %p70_p11 = por %p69_p10, %p68_p9 }
  0x19   :  { %p71_p12 = pnand %p70_p11, %p64_p8 }
  0x1b   :  { %74 = shalt.err (!%p71_p12)
}
  0x1c   :  { %s75_s23 = scalar_lea.hbm %s126_s1, 128 }
  0x1d   :  { %p76_p13 = scmp.ne.s32.totalorder %s126_s1, %s75_s23  ;;  %p79_p0 = scmp.lt.u32.totalorder %s75_s23, %s126_s1 }
  0x1f   :  { %p81_p1 = pnand %p79_p0, %p76_p13 }
  0x21   :  { %84 = shalt.err (!%p81_p1)
}
  0x22   :  { %33 = dma.vmem_to_hbm [thread:$0]  %s31_s19, 128, %s126_s1, [#allocation4]  }
  0x23   :  { %87 = dma.done.wait [#allocation4], 128  }
  0x24   :  { %88 = vsyncadd [#allocation4], 4294967168 }
  0x25   :  { %37 = vsyncpa [#allocation3], 1 }
  0x26   :  { %38 = vsyncpa [#allocation4], 1 }

</bundles_post_ra>
